<compile_context>
chip_gen: v5e
topology: v5e:2x2
jax: 0.10.0
libtpu: 0.0.40
codegen_flags: <defaults>
</compile_context>

<pallas_src>
import functools
import math

import jax
import jax.numpy as jnp
from jax.experimental import pallas as pl
from jax.experimental.pallas import tpu as pltpu

D_MODEL = 128
N_HEAD = 4
HEAD_DIM = D_MODEL // N_HEAD          # 32
D_FF = 256
IN_FEATURES = 784                     # 28 * 28 (full last dim of the x block)
NUM_CLASSES = 10
OUT_PAD = 128                         # lane-dense padded logits (bf16 store)
LN_EPS = 1e-5                         # PyTorch TransformerEncoderLayer default

# ---- rows of the packed small-parameter slab (f32, shape (N_VROWS, VEC_W)) ----
VEC_W = 256
(R_BP1,     # b_pe + pos[1]                     [:128]
 R_T0,      # cls + pos[0]                      [:128]
 R_V0,      # v0 = t0 @ w_v + b_v               [:128]
 R_B_V,     # b_v                               [:128]
 R_S00C,    # s00 - c01  (per-head CLS score)   [:4]
 R_B_O,     # attention out-proj bias           [:128]
 R_G1, R_BETA1,                                 # LayerNorm1
 R_B_FF1,   # FFN bias 1                        [:256]
 R_B_FF2,   # FFN bias 2                        [:128]
 R_G2, R_BETA2,                                 # LayerNorm2
 R_B_H,     # head bias (padded)                [:128]
 ) = range(13)
N_VROWS = 16


def _round_up(n, m):
    return ((n + m - 1) // m) * m


def _layer_norm(x, gamma, beta):
    mu = jnp.mean(x, axis=-1, keepdims=True)
    var = jnp.mean((x - mu) ** 2, axis=-1, keepdims=True)
    return (x - mu) * jax.lax.rsqrt(var + LN_EPS) * gamma + beta


def vit_kernel(x_ref, w_pe_ref, w_kv2_ref, w_o_ref,
               w_ff1_ref, w_ff2_ref, w_h_ref, expand_ref, vecs_ref,
               out_ref):
    """Full ViT forward for one batch tile of TB rows."""
    vec = vecs_ref[...]                                          # (16, 256) f32

    # ---- patch embedding: Linear(784 -> 128); bf16 cast done in-kernel ----
    x = x_ref[...].astype(jnp.bfloat16)                          # (TB, 784)
    t1 = jnp.dot(x, w_pe_ref[...],
                 preferred_element_type=jnp.float32) + vec[R_BP1, :D_MODEL]

    # ---- fused V-projection + folded per-head score of the patch token ----
    # columns [0:128] = w_v, columns [128:132] = w_ks = (w_k * q0_scaled) @ seg
    kv = jnp.dot(t1.astype(jnp.bfloat16), w_kv2_ref[...],
                 preferred_element_type=jnp.float32)             # (TB, 132)
    v1 = kv[:, :D_MODEL] + vec[R_B_V, :D_MODEL]                  # (TB, 128)
    s01 = kv[:, D_MODEL:]                                        # (TB, 4)

    # ---- CLS-query attention: closed-form 2-token softmax per head ----
    # p00 = exp(s00)/(exp(s00)+exp(s01)) = sigmoid(s00 - s01)
    p00 = jax.nn.sigmoid(vec[R_S00C, :N_HEAD] - s01)             # (TB, 4)
    pexp = jnp.dot(p00.astype(jnp.bfloat16), expand_ref[...],
                   preferred_element_type=jnp.float32)           # (TB, 128)
    a0 = v1 + pexp * (vec[R_V0, :D_MODEL] - v1)                  # p00*v0 + p01*v1

    attn = jnp.dot(a0.astype(jnp.bfloat16), w_o_ref[...],
                   preferred_element_type=jnp.float32) + vec[R_B_O, :D_MODEL]

    # ---- residual + LayerNorm1 (post-norm layer) ----
    # TODO(synk): dropout (p=0.1) from TransformerEncoderLayer omitted (eval mode).
    z = _layer_norm(vec[R_T0, :D_MODEL] + attn,
                    vec[R_G1, :D_MODEL], vec[R_BETA1, :D_MODEL])

    # ---- feed-forward 128 -> 256 -> 128 with ReLU, residual + LayerNorm2 ----
    h = jnp.dot(z.astype(jnp.bfloat16), w_ff1_ref[...],
                preferred_element_type=jnp.float32) + vec[R_B_FF1]
    h = jnp.maximum(h, 0.0)
    ff = jnp.dot(h.astype(jnp.bfloat16), w_ff2_ref[...],
                 preferred_element_type=jnp.float32) + vec[R_B_FF2, :D_MODEL]
    z = _layer_norm(z + ff, vec[R_G2, :D_MODEL], vec[R_BETA2, :D_MODEL])

    # ---- classification head on the CLS token (128 padded lanes, bf16 store) ----
    logits = jnp.dot(z.astype(jnp.bfloat16), w_h_ref[...],
                     preferred_element_type=jnp.float32) + vec[R_B_H, :OUT_PAD]
    out_ref[...] = logits.astype(out_ref.dtype)


def make_params(key):
    ks = jax.random.split(key, 9)

    def w(k, shape, scale=0.02):
        return (scale * jax.random.normal(k, shape)).astype(jnp.float32)

    z = lambda *s: jnp.zeros(s, jnp.float32)
    o = lambda *s: jnp.ones(s, jnp.float32)
    return {
        "w_pe": w(ks[0], (IN_FEATURES, D_MODEL)), "b_pe": z(1, D_MODEL),
        "cls": z(1, D_MODEL),                                     # nn.Parameter(zeros)
        "pos": jax.random.normal(ks[1], (2, D_MODEL), jnp.float32),  # randn
        "w_q": w(ks[2], (D_MODEL, D_MODEL)), "b_q": z(1, D_MODEL),
        "w_k": w(ks[3], (D_MODEL, D_MODEL)), "b_k": z(1, D_MODEL),
        "w_v": w(ks[4], (D_MODEL, D_MODEL)), "b_v": z(1, D_MODEL),
        "w_o": w(ks[5], (D_MODEL, D_MODEL)), "b_o": z(1, D_MODEL),
        "g1": o(1, D_MODEL), "beta1": z(1, D_MODEL),
        "w_ff1": w(ks[6], (D_MODEL, D_FF)), "b_ff1": z(1, D_FF),
        "w_ff2": w(ks[7], (D_FF, D_MODEL)), "b_ff2": z(1, D_MODEL),
        "g2": o(1, D_MODEL), "beta2": z(1, D_MODEL),
        "w_h": w(ks[8], (D_MODEL, NUM_CLASSES)), "b_h": z(1, NUM_CLASSES),
    }


def prepare_params(params):
    """One-time packing: CLS precompute, algebraic folds, bf16 casts, padding.

    Call once; pass the result to vit_forward on every call.
    """
    scale = 1.0 / math.sqrt(HEAD_DIM)

    cls = params["cls"].astype(jnp.float32)
    pos = params["pos"].astype(jnp.float32)

    # batch-invariant CLS token precompute
    t0 = cls + pos[0:1, :]                                       # (1, 128)
    q0s = (t0 @ params["w_q"] + params["b_q"]) * scale
    k0 = t0 @ params["w_k"] + params["b_k"]
    v0 = t0 @ params["w_v"] + params["b_v"]
    s00 = jnp.sum((q0s * k0).reshape(1, N_HEAD, HEAD_DIM), axis=-1)   # (1, 4)

    # per-head segment-sum matrix (lane -> head)
    lane_head = jnp.arange(D_MODEL, dtype=jnp.int32) // HEAD_DIM
    heads = jnp.arange(N_HEAD, dtype=jnp.int32)
    seg = (lane_head[:, None] == heads[None, :]).astype(jnp.float32)  # (128, 4)

    # fold the scaled CLS query + per-head reduction into the K projection:
    #   s01 = t1 @ w_ks + c01
    w_ks = (params["w_k"] * q0s) @ seg                           # (128, 4)
    c01 = (params["b_k"] * q0s) @ seg                            # (1, 4)

    w_kv2 = jnp.concatenate([params["w_v"], w_ks], axis=1)       # (128, 132)

    w_h = jnp.pad(params["w_h"], ((0, 0), (0, OUT_PAD - NUM_CLASSES)))
    b_h = jnp.pad(params["b_h"], ((0, 0), (0, OUT_PAD - NUM_CLASSES)))

    def vrow(a):
        a = a.reshape(1, -1).astype(jnp.float32)
        return jnp.pad(a, ((0, 0), (0, VEC_W - a.shape[1])))

    rows = [
        vrow(params["b_pe"] + pos[1:2, :]),     # R_BP1
        vrow(t0),                               # R_T0
        vrow(v0),                               # R_V0
        vrow(params["b_v"]),                    # R_B_V
        vrow(s00 - c01),                        # R_S00C
        vrow(params["b_o"]),                    # R_B_O
        vrow(params["g1"]),                     # R_G1
        vrow(params["beta1"]),                  # R_BETA1
        vrow(params["b_ff1"]),                  # R_B_FF1 (full 256 wide)
        vrow(params["b_ff2"]),                  # R_B_FF2
        vrow(params["g2"]),                     # R_G2
        vrow(params["beta2"]),                  # R_BETA2
        vrow(b_h),                              # R_B_H
    ]
    rows.append(jnp.zeros((N_VROWS - len(rows), VEC_W), jnp.float32))
    vecs = jnp.concatenate(rows, axis=0)                          # (16, 256) f32

    bf16 = lambda a: a.astype(jnp.bfloat16)
    return {
        "w_pe": bf16(params["w_pe"]),     # (784, 128)
        "w_kv2": bf16(w_kv2),             # (128, 132)
        "w_o": bf16(params["w_o"]),       # (128, 128)
        "w_ff1": bf16(params["w_ff1"]),   # (128, 256)
        "w_ff2": bf16(params["w_ff2"]),   # (256, 128)
        "w_h": bf16(w_h),                 # (128, 128)
        "expand": bf16(seg.T),            # (4, 128)
        "vecs": vecs,                     # (16, 256) f32
    }


@functools.partial(jax.jit, static_argnames=("tb",))
def vit_forward(x_nchw, prep, tb=256):
    B = x_nchw.shape[0]

    # Pick TB from the grid (minimal batch padding).  TB is a multiple of 16 so
    # f32 input blocks, bf16 intermediates and the bf16 output block all hit
    # clean (8,128)/(16,128) tiles.  Force >= 2 grid steps when B > 16 so the
    # "parallel" batch axis can shard across both v7x TensorCores.
    tb = max(16, (int(tb) // 16) * 16)
    grid_n = max(pl.cdiv(B, tb), 1)
    if grid_n < 2 and B > 16:
        grid_n = 2
    TB = _round_up(pl.cdiv(B, grid_n), 16)
    B_pad = TB * grid_n

    # glue: flatten NCHW; pad the batch only when it is not a TB multiple.
    x = x_nchw.reshape(B, IN_FEATURES)
    if B_pad != B:
        x = jnp.pad(x, ((0, B_pad - B), (0, 0)))

    weights = [prep["w_pe"], prep["w_kv2"], prep["w_o"],
               prep["w_ff1"], prep["w_ff2"], prep["w_h"],
               prep["expand"], prep["vecs"]]

    def resident(a):
        # constant block index => stays resident in VMEM across grid steps
        return pl.BlockSpec(a.shape, lambda i: (0, 0))

    in_specs = [pl.BlockSpec((TB, IN_FEATURES), lambda i: (i, 0))]
    in_specs += [resident(a) for a in weights]
    out_spec = pl.BlockSpec((TB, OUT_PAD), lambda i: (i, 0))

    # advisory cost estimate so XLA schedules the custom call sensibly
    flops = 2 * B_pad * (IN_FEATURES * D_MODEL          # patch embed
                         + D_MODEL * (D_MODEL + N_HEAD) # fused V / score proj
                         + N_HEAD * D_MODEL             # prob expand
                         + D_MODEL * D_MODEL            # out proj
                         + 2 * D_MODEL * D_FF           # FFN
                         + D_MODEL * OUT_PAD)           # head
    bytes_accessed = (int(x.size) * x.dtype.itemsize + B_pad * OUT_PAD * 2
                      + sum(int(a.size) * a.dtype.itemsize for a in weights))
    cost = pl.CostEstimate(flops=flops, transcendentals=6 * B_pad,
                           bytes_accessed=bytes_accessed)

    out = pl.pallas_call(
        vit_kernel,
        out_shape=jax.ShapeDtypeStruct((B_pad, OUT_PAD), jnp.bfloat16),
        grid_spec=pltpu.PrefetchScalarGridSpec(
            num_scalar_prefetch=0,
            grid=(grid_n,),
            in_specs=in_specs,
            out_specs=out_spec,
        ),
        compiler_params=pltpu.CompilerParams(
            dimension_semantics=("parallel",)),
        cost_estimate=cost,
    )(x, *weights)

    return out[:B, :NUM_CLASSES].astype(jnp.float32)


if __name__ == "__main__":
    key = jax.random.PRNGKey(0)
    pkey, xkey = jax.random.split(key)
    params = make_params(pkey)
    prep = prepare_params(params)          # one-time packing (outside the hot path)

    B = 8
    x = jax.random.normal(xkey, (B, 1, 28, 28), jnp.float32)   # MNIST-shaped input

    logits = jax.block_until_ready(vit_forward(x, prep))
    assert logits.shape == (B, NUM_CLASSES) and logits.dtype == jnp.float32
    assert bool(jnp.all(jnp.isfinite(logits)))
    print("KERNEL_OK")
</pallas_src>

<mosaic_0001>
module attributes {stable_mosaic.version = 11 : i64} {
  func.func @vit_kernel(%arg0: i32, %arg1: memref<16x784xf32, #tpu.memory_space<vmem>>, %arg2: memref<784x128xbf16, #tpu.memory_space<vmem>>, %arg3: memref<128x132xbf16, #tpu.memory_space<vmem>>, %arg4: memref<128x128xbf16, #tpu.memory_space<vmem>>, %arg5: memref<128x256xbf16, #tpu.memory_space<vmem>>, %arg6: memref<256x128xbf16, #tpu.memory_space<vmem>>, %arg7: memref<128x128xbf16, #tpu.memory_space<vmem>>, %arg8: memref<4x128xbf16, #tpu.memory_space<vmem>>, %arg9: memref<16x256xf32, #tpu.memory_space<vmem>>, %arg10: memref<16x128xbf16, #tpu.memory_space<vmem>>) attributes {dimension_semantics = [#tpu.dimension_semantics<parallel>], iteration_bounds = array<i64: 1>, scalar_prefetch = 0 : i64, scratch_operands = 0 : i64, tpu.core_type = #tpu.core_type<tc>, window_params = [{transform_indices = @transform_0, window_bounds = array<i64: 16, 784>}, {pipeline_mode = #tpu.pipeline_mode<synchronous>, transform_indices = @transform_1, window_bounds = array<i64: 784, 128>}, {pipeline_mode = #tpu.pipeline_mode<synchronous>, transform_indices = @transform_2, window_bounds = array<i64: 128, 132>}, {pipeline_mode = #tpu.pipeline_mode<synchronous>, transform_indices = @transform_3, window_bounds = array<i64: 128, 128>}, {pipeline_mode = #tpu.pipeline_mode<synchronous>, transform_indices = @transform_4, window_bounds = array<i64: 128, 256>}, {pipeline_mode = #tpu.pipeline_mode<synchronous>, transform_indices = @transform_5, window_bounds = array<i64: 256, 128>}, {pipeline_mode = #tpu.pipeline_mode<synchronous>, transform_indices = @transform_6, window_bounds = array<i64: 128, 128>}, {pipeline_mode = #tpu.pipeline_mode<synchronous>, transform_indices = @transform_7, window_bounds = array<i64: 4, 128>}, {pipeline_mode = #tpu.pipeline_mode<synchronous>, transform_indices = @transform_8, window_bounds = array<i64: 16, 256>}, {transform_indices = @transform_9, window_bounds = array<i64: 16, 128>}]} {
    %c0 = arith.constant 0 : index
    %c0_0 = arith.constant 0 : index
    %0 = vector.load %arg9[%c0, %c0_0] : memref<16x256xf32, #tpu.memory_space<vmem>>, vector<16x256xf32>
    %c0_1 = arith.constant 0 : index
    %c0_2 = arith.constant 0 : index
    %1 = vector.load %arg1[%c0_1, %c0_2] : memref<16x784xf32, #tpu.memory_space<vmem>>, vector<16x784xf32>
    %2 = arith.truncf %1 : vector<16x784xf32> to vector<16x784xbf16>
    %c0_3 = arith.constant 0 : index
    %c0_4 = arith.constant 0 : index
    %3 = vector.load %arg2[%c0_3, %c0_4] : memref<784x128xbf16, #tpu.memory_space<vmem>>, vector<784x128xbf16>
    %cst = arith.constant dense<0.000000e+00> : vector<16x128xf32>
    %4 = tpu.matmul %2, %3, %cst {dimension_numbers = #tpu.dot_dimension_numbers<[1], [0], [0], [1], [0, 0, 1, 1], [], []>} : vector<16x784xbf16>, vector<784x128xbf16>, vector<16x128xf32> -> vector<16x128xf32>
    %5 = vector.extract_strided_slice %0 {offsets = [0, 0], sizes = [1, 128], strides = [1, 1]} : vector<16x256xf32> to vector<1x128xf32>
    %6 = vector.shape_cast %5 : vector<1x128xf32> to vector<128xf32>
    %7 = vector.shape_cast %6 : vector<128xf32> to vector<1x128xf32>
    %8 = vector.broadcast %7 : vector<1x128xf32> to vector<16x128xf32>
    %9 = arith.addf %4, %8 : vector<16x128xf32>
    %10 = arith.truncf %9 : vector<16x128xf32> to vector<16x128xbf16>
    %c0_5 = arith.constant 0 : index
    %c0_6 = arith.constant 0 : index
    %11 = vector.load %arg3[%c0_5, %c0_6] : memref<128x132xbf16, #tpu.memory_space<vmem>>, vector<128x132xbf16>
    %cst_7 = arith.constant dense<0.000000e+00> : vector<16x132xf32>
    %12 = tpu.matmul %10, %11, %cst_7 {dimension_numbers = #tpu.dot_dimension_numbers<[1], [0], [0], [1], [0, 0, 1, 1], [], []>} : vector<16x128xbf16>, vector<128x132xbf16>, vector<16x132xf32> -> vector<16x132xf32>
    %13 = vector.extract_strided_slice %12 {offsets = [0, 0], sizes = [16, 128], strides = [1, 1]} : vector<16x132xf32> to vector<16x128xf32>
    %14 = vector.extract_strided_slice %0 {offsets = [3, 0], sizes = [1, 128], strides = [1, 1]} : vector<16x256xf32> to vector<1x128xf32>
    %15 = vector.shape_cast %14 : vector<1x128xf32> to vector<128xf32>
    %16 = vector.shape_cast %15 : vector<128xf32> to vector<1x128xf32>
    %17 = vector.broadcast %16 : vector<1x128xf32> to vector<16x128xf32>
    %18 = arith.addf %13, %17 : vector<16x128xf32>
    %19 = vector.extract_strided_slice %12 {offsets = [0, 128], sizes = [16, 4], strides = [1, 1]} : vector<16x132xf32> to vector<16x4xf32>
    %20 = vector.extract_strided_slice %0 {offsets = [4, 0], sizes = [1, 4], strides = [1, 1]} : vector<16x256xf32> to vector<1x4xf32>
    %21 = vector.shape_cast %20 : vector<1x4xf32> to vector<4xf32>
    %22 = vector.shape_cast %21 : vector<4xf32> to vector<1x4xf32>
    %23 = vector.broadcast %22 : vector<1x4xf32> to vector<16x4xf32>
    %24 = arith.subf %23, %19 : vector<16x4xf32>
    %25 = arith.negf %24 : vector<16x4xf32>
    %26 = math.exp %25 : vector<16x4xf32>
    %cst_8 = arith.constant 1.000000e+00 : f32
    %27 = vector.broadcast %cst_8 : f32 to vector<16x4xf32>
    %28 = arith.addf %27, %26 : vector<16x4xf32>
    %29 = arith.divf %27, %28 : vector<16x4xf32>
    %30 = arith.truncf %29 : vector<16x4xf32> to vector<16x4xbf16>
    %c0_9 = arith.constant 0 : index
    %c0_10 = arith.constant 0 : index
    %31 = vector.load %arg8[%c0_9, %c0_10] : memref<4x128xbf16, #tpu.memory_space<vmem>>, vector<4x128xbf16>
    %cst_11 = arith.constant dense<0.000000e+00> : vector<16x128xf32>
    %32 = tpu.matmul %30, %31, %cst_11 {dimension_numbers = #tpu.dot_dimension_numbers<[1], [0], [0], [1], [0, 0, 1, 1], [], []>} : vector<16x4xbf16>, vector<4x128xbf16>, vector<16x128xf32> -> vector<16x128xf32>
    %33 = vector.extract_strided_slice %0 {offsets = [2, 0], sizes = [1, 128], strides = [1, 1]} : vector<16x256xf32> to vector<1x128xf32>
    %34 = vector.shape_cast %33 : vector<1x128xf32> to vector<128xf32>
    %35 = vector.shape_cast %34 : vector<128xf32> to vector<1x128xf32>
    %36 = vector.broadcast %35 : vector<1x128xf32> to vector<16x128xf32>
    %37 = arith.subf %36, %18 : vector<16x128xf32>
    %38 = arith.mulf %32, %37 : vector<16x128xf32>
    %39 = arith.addf %18, %38 : vector<16x128xf32>
    %40 = arith.truncf %39 : vector<16x128xf32> to vector<16x128xbf16>
    %c0_12 = arith.constant 0 : index
    %c0_13 = arith.constant 0 : index
    %41 = vector.load %arg4[%c0_12, %c0_13] : memref<128x128xbf16, #tpu.memory_space<vmem>>, vector<128x128xbf16>
    %cst_14 = arith.constant dense<0.000000e+00> : vector<16x128xf32>
    %42 = tpu.matmul %40, %41, %cst_14 {dimension_numbers = #tpu.dot_dimension_numbers<[1], [0], [0], [1], [0, 0, 1, 1], [], []>} : vector<16x128xbf16>, vector<128x128xbf16>, vector<16x128xf32> -> vector<16x128xf32>
    %43 = vector.extract_strided_slice %0 {offsets = [5, 0], sizes = [1, 128], strides = [1, 1]} : vector<16x256xf32> to vector<1x128xf32>
    %44 = vector.shape_cast %43 : vector<1x128xf32> to vector<128xf32>
    %45 = vector.shape_cast %44 : vector<128xf32> to vector<1x128xf32>
    %46 = vector.broadcast %45 : vector<1x128xf32> to vector<16x128xf32>
    %47 = arith.addf %42, %46 : vector<16x128xf32>
    %48 = vector.extract_strided_slice %0 {offsets = [1, 0], sizes = [1, 128], strides = [1, 1]} : vector<16x256xf32> to vector<1x128xf32>
    %49 = vector.shape_cast %48 : vector<1x128xf32> to vector<128xf32>
    %50 = vector.shape_cast %49 : vector<128xf32> to vector<1x128xf32>
    %51 = vector.broadcast %50 : vector<1x128xf32> to vector<16x128xf32>
    %52 = arith.addf %51, %47 : vector<16x128xf32>
    %53 = vector.extract_strided_slice %0 {offsets = [6, 0], sizes = [1, 128], strides = [1, 1]} : vector<16x256xf32> to vector<1x128xf32>
    %54 = vector.shape_cast %53 : vector<1x128xf32> to vector<128xf32>
    %55 = vector.extract_strided_slice %0 {offsets = [7, 0], sizes = [1, 128], strides = [1, 1]} : vector<16x256xf32> to vector<1x128xf32>
    %56 = vector.shape_cast %55 : vector<1x128xf32> to vector<128xf32>
    %cst_15 = arith.constant dense<0.000000e+00> : vector<16xf32>
    %57 = vector.multi_reduction <add>, %52, %cst_15 [1] : vector<16x128xf32> to vector<16xf32>
    %58 = vector.shape_cast %57 : vector<16xf32> to vector<16x1xf32>
    %cst_16 = arith.constant 1.280000e+02 : f32
    %59 = vector.broadcast %cst_16 : f32 to vector<16x1xf32>
    %60 = arith.divf %58, %59 : vector<16x1xf32>
    %61 = vector.broadcast %60 : vector<16x1xf32> to vector<16x128xf32>
    %62 = arith.subf %52, %61 : vector<16x128xf32>
    %63 = arith.mulf %62, %62 : vector<16x128xf32>
    %cst_17 = arith.constant dense<0.000000e+00> : vector<16xf32>
    %64 = vector.multi_reduction <add>, %63, %cst_17 [1] : vector<16x128xf32> to vector<16xf32>
    %65 = vector.shape_cast %64 : vector<16xf32> to vector<16x1xf32>
    %cst_18 = arith.constant 1.280000e+02 : f32
    %66 = vector.broadcast %cst_18 : f32 to vector<16x1xf32>
    %67 = arith.divf %65, %66 : vector<16x1xf32>
    %68 = vector.broadcast %60 : vector<16x1xf32> to vector<16x128xf32>
    %69 = arith.subf %52, %68 : vector<16x128xf32>
    %cst_19 = arith.constant 9.99999974E-6 : f32
    %70 = vector.broadcast %cst_19 : f32 to vector<16x1xf32>
    %71 = arith.addf %67, %70 : vector<16x1xf32>
    %72 = math.rsqrt %71 : vector<16x1xf32>
    %73 = vector.broadcast %72 : vector<16x1xf32> to vector<16x128xf32>
    %74 = arith.mulf %69, %73 : vector<16x128xf32>
    %75 = vector.shape_cast %54 : vector<128xf32> to vector<1x128xf32>
    %76 = vector.broadcast %75 : vector<1x128xf32> to vector<16x128xf32>
    %77 = arith.mulf %74, %76 : vector<16x128xf32>
    %78 = vector.shape_cast %56 : vector<128xf32> to vector<1x128xf32>
    %79 = vector.broadcast %78 : vector<1x128xf32> to vector<16x128xf32>
    %80 = arith.addf %77, %79 : vector<16x128xf32>
    %81 = arith.truncf %80 : vector<16x128xf32> to vector<16x128xbf16>
    %c0_20 = arith.constant 0 : index
    %c0_21 = arith.constant 0 : index
    %82 = vector.load %arg5[%c0_20, %c0_21] : memref<128x256xbf16, #tpu.memory_space<vmem>>, vector<128x256xbf16>
    %cst_22 = arith.constant dense<0.000000e+00> : vector<16x256xf32>
    %83 = tpu.matmul %81, %82, %cst_22 {dimension_numbers = #tpu.dot_dimension_numbers<[1], [0], [0], [1], [0, 0, 1, 1], [], []>} : vector<16x128xbf16>, vector<128x256xbf16>, vector<16x256xf32> -> vector<16x256xf32>
    %84 = vector.extract_strided_slice %0 {offsets = [8, 0], sizes = [1, 256], strides = [1, 1]} : vector<16x256xf32> to vector<1x256xf32>
    %85 = vector.shape_cast %84 : vector<1x256xf32> to vector<256xf32>
    %86 = vector.shape_cast %85 : vector<256xf32> to vector<1x256xf32>
    %87 = vector.broadcast %86 : vector<1x256xf32> to vector<16x256xf32>
    %88 = arith.addf %83, %87 : vector<16x256xf32>
    %cst_23 = arith.constant 0.000000e+00 : f32
    %89 = vector.broadcast %cst_23 : f32 to vector<16x256xf32>
    %90 = arith.maximumf %88, %89 : vector<16x256xf32>
    %91 = arith.truncf %90 : vector<16x256xf32> to vector<16x256xbf16>
    %c0_24 = arith.constant 0 : index
    %c0_25 = arith.constant 0 : index
    %92 = vector.load %arg6[%c0_24, %c0_25] : memref<256x128xbf16, #tpu.memory_space<vmem>>, vector<256x128xbf16>
    %cst_26 = arith.constant dense<0.000000e+00> : vector<16x128xf32>
    %93 = tpu.matmul %91, %92, %cst_26 {dimension_numbers = #tpu.dot_dimension_numbers<[1], [0], [0], [1], [0, 0, 1, 1], [], []>} : vector<16x256xbf16>, vector<256x128xbf16>, vector<16x128xf32> -> vector<16x128xf32>
    %94 = vector.extract_strided_slice %0 {offsets = [9, 0], sizes = [1, 128], strides = [1, 1]} : vector<16x256xf32> to vector<1x128xf32>
    %95 = vector.shape_cast %94 : vector<1x128xf32> to vector<128xf32>
    %96 = vector.shape_cast %95 : vector<128xf32> to vector<1x128xf32>
    %97 = vector.broadcast %96 : vector<1x128xf32> to vector<16x128xf32>
    %98 = arith.addf %93, %97 : vector<16x128xf32>
    %99 = arith.addf %80, %98 : vector<16x128xf32>
    %100 = vector.extract_strided_slice %0 {offsets = [10, 0], sizes = [1, 128], strides = [1, 1]} : vector<16x256xf32> to vector<1x128xf32>
    %101 = vector.shape_cast %100 : vector<1x128xf32> to vector<128xf32>
    %102 = vector.extract_strided_slice %0 {offsets = [11, 0], sizes = [1, 128], strides = [1, 1]} : vector<16x256xf32> to vector<1x128xf32>
    %103 = vector.shape_cast %102 : vector<1x128xf32> to vector<128xf32>
    %cst_27 = arith.constant dense<0.000000e+00> : vector<16xf32>
    %104 = vector.multi_reduction <add>, %99, %cst_27 [1] : vector<16x128xf32> to vector<16xf32>
    %105 = vector.shape_cast %104 : vector<16xf32> to vector<16x1xf32>
    %cst_28 = arith.constant 1.280000e+02 : f32
    %106 = vector.broadcast %cst_28 : f32 to vector<16x1xf32>
    %107 = arith.divf %105, %106 : vector<16x1xf32>
    %108 = vector.broadcast %107 : vector<16x1xf32> to vector<16x128xf32>
    %109 = arith.subf %99, %108 : vector<16x128xf32>
    %110 = arith.mulf %109, %109 : vector<16x128xf32>
    %cst_29 = arith.constant dense<0.000000e+00> : vector<16xf32>
    %111 = vector.multi_reduction <add>, %110, %cst_29 [1] : vector<16x128xf32> to vector<16xf32>
    %112 = vector.shape_cast %111 : vector<16xf32> to vector<16x1xf32>
    %cst_30 = arith.constant 1.280000e+02 : f32
    %113 = vector.broadcast %cst_30 : f32 to vector<16x1xf32>
    %114 = arith.divf %112, %113 : vector<16x1xf32>
    %115 = vector.broadcast %107 : vector<16x1xf32> to vector<16x128xf32>
    %116 = arith.subf %99, %115 : vector<16x128xf32>
    %cst_31 = arith.constant 9.99999974E-6 : f32
    %117 = vector.broadcast %cst_31 : f32 to vector<16x1xf32>
    %118 = arith.addf %114, %117 : vector<16x1xf32>
    %119 = math.rsqrt %118 : vector<16x1xf32>
    %120 = vector.broadcast %119 : vector<16x1xf32> to vector<16x128xf32>
    %121 = arith.mulf %116, %120 : vector<16x128xf32>
    %122 = vector.shape_cast %101 : vector<128xf32> to vector<1x128xf32>
    %123 = vector.broadcast %122 : vector<1x128xf32> to vector<16x128xf32>
    %124 = arith.mulf %121, %123 : vector<16x128xf32>
    %125 = vector.shape_cast %103 : vector<128xf32> to vector<1x128xf32>
    %126 = vector.broadcast %125 : vector<1x128xf32> to vector<16x128xf32>
    %127 = arith.addf %124, %126 : vector<16x128xf32>
    %128 = arith.truncf %127 : vector<16x128xf32> to vector<16x128xbf16>
    %c0_32 = arith.constant 0 : index
    %c0_33 = arith.constant 0 : index
    %129 = vector.load %arg7[%c0_32, %c0_33] : memref<128x128xbf16, #tpu.memory_space<vmem>>, vector<128x128xbf16>
    %cst_34 = arith.constant dense<0.000000e+00> : vector<16x128xf32>
    %130 = tpu.matmul %128, %129, %cst_34 {dimension_numbers = #tpu.dot_dimension_numbers<[1], [0], [0], [1], [0, 0, 1, 1], [], []>} : vector<16x128xbf16>, vector<128x128xbf16>, vector<16x128xf32> -> vector<16x128xf32>
    %131 = vector.extract_strided_slice %0 {offsets = [12, 0], sizes = [1, 128], strides = [1, 1]} : vector<16x256xf32> to vector<1x128xf32>
    %132 = vector.shape_cast %131 : vector<1x128xf32> to vector<128xf32>
    %133 = vector.shape_cast %132 : vector<128xf32> to vector<1x128xf32>
    %134 = vector.broadcast %133 : vector<1x128xf32> to vector<16x128xf32>
    %135 = arith.addf %130, %134 : vector<16x128xf32>
    %136 = arith.truncf %135 : vector<16x128xf32> to vector<16x128xbf16>
    %c0_35 = arith.constant 0 : index
    %c0_36 = arith.constant 0 : index
    %137 = vector.load %arg10[%c0_35, %c0_36] : memref<16x128xbf16, #tpu.memory_space<vmem>>, vector<16x128xbf16>
    tpu.vector_store %arg10[%c0_35, %c0_36], %136 {strides = array<i32>} : memref<16x128xbf16, #tpu.memory_space<vmem>>, vector<16x128xbf16>,
    return
  }
  func.func @transform_0(%arg0: i32) -> (i32, i32) {
    %c0_i32 = arith.constant 0 : i32
    %c0_i32_0 = arith.constant 0 : i32
    return %arg0, %c0_i32 : i32, i32
  }
  func.func @transform_1(%arg0: i32) -> (i32, i32) {
    %c0_i32 = arith.constant 0 : i32
    %c0_i32_0 = arith.constant 0 : i32
    %c0_i32_1 = arith.constant 0 : i32
    return %c0_i32, %c0_i32_0 : i32, i32
  }
  func.func @transform_2(%arg0: i32) -> (i32, i32) {
    %c0_i32 = arith.constant 0 : i32
    %c0_i32_0 = arith.constant 0 : i32
    %c0_i32_1 = arith.constant 0 : i32
    return %c0_i32, %c0_i32_0 : i32, i32
  }
  func.func @transform_3(%arg0: i32) -> (i32, i32) {
    %c0_i32 = arith.constant 0 : i32
    %c0_i32_0 = arith.constant 0 : i32
    %c0_i32_1 = arith.constant 0 : i32
    return %c0_i32, %c0_i32_0 : i32, i32
  }
  func.func @transform_4(%arg0: i32) -> (i32, i32) {
    %c0_i32 = arith.constant 0 : i32
    %c0_i32_0 = arith.constant 0 : i32
    %c0_i32_1 = arith.constant 0 : i32
    return %c0_i32, %c0_i32_0 : i32, i32
  }
  func.func @transform_5(%arg0: i32) -> (i32, i32) {
    %c0_i32 = arith.constant 0 : i32
    %c0_i32_0 = arith.constant 0 : i32
    %c0_i32_1 = arith.constant 0 : i32
    return %c0_i32, %c0_i32_0 : i32, i32
  }
  func.func @transform_6(%arg0: i32) -> (i32, i32) {
    %c0_i32 = arith.constant 0 : i32
    %c0_i32_0 = arith.constant 0 : i32
    %c0_i32_1 = arith.constant 0 : i32
    return %c0_i32, %c0_i32_0 : i32, i32
  }
  func.func @transform_7(%arg0: i32) -> (i32, i32) {
    %c0_i32 = arith.constant 0 : i32
    %c0_i32_0 = arith.constant 0 : i32
    %c0_i32_1 = arith.constant 0 : i32
    return %c0_i32, %c0_i32_0 : i32, i32
  }
  func.func @transform_8(%arg0: i32) -> (i32, i32) {
    %c0_i32 = arith.constant 0 : i32
    %c0_i32_0 = arith.constant 0 : i32
    %c0_i32_1 = arith.constant 0 : i32
    return %c0_i32, %c0_i32_0 : i32, i32
  }
  func.func @transform_9(%arg0: i32) -> (i32, i32) {
    %c0_i32 = arith.constant 0 : i32
    %c0_i32_0 = arith.constant 0 : i32
    return %arg0, %c0_i32 : i32, i32
  }
}

</mosaic_0001>

<bundles_post_ra>
// kernel: vit_forward.1
= control target key start
LH: loop header
LB: loop body
LE: loop exit
PB: predicated region body
PF: predicated region fallthrough
CT: control target
= control target key end

     0   :  { %vm450_vm0 = vcmask 130048   ;;  %vm727_vm1 = vcmask 1041408   ;;  %vm723_vm10 = vcmask 31744   ;;  %s2487_s1 = inlined_call_operand.vmem [shape: bf16[784,128], index: 1, kind: input, shape index: {}]   ;;  %s2488_s0 = inlined_call_operand.vmem [shape: f32[16,784], index: 0, kind: input, shape index: {}]   ;;  %s2489_s2 = inlined_call_operand.vmem [shape: bf16[128,132], index: 2, kind: input, shape index: {}]   ;;  %s2490_s8 = inlined_call_operand.vmem [shape: f32[16,256], index: 8, kind: input, shape index: {}]   ;;  %s2491_s7 = inlined_call_operand.vmem [shape: bf16[4,128], index: 7, kind: input, shape index: {}]   ;;  %s2492_s3 = inlined_call_operand.vmem [shape: bf16[128,128], index: 3, kind: input, shape index: {}]   ;;  %s2493_s4 = inlined_call_operand.vmem [shape: bf16[128,256], index: 4, kind: input, shape index: {}]   ;;  %s2494_s5 = inlined_call_operand.vmem [shape: bf16[256,128], index: 5, kind: input, shape index: {}]   ;;  %s2495_s6 = inlined_call_operand.vmem [shape: bf16[128,128], index: 6, kind: input, shape index: {}]   ;;  %s2496_s9 = inlined_call_operand.vmem [shape: bf16[16,128], index: 9, kind: output, shape index: {}]  }
   0x1   :  { %v1777_v0 = vld [vmem:[%s2487_s1 + $0x38] sm:$0xff]  ;;  %v1776_v4 = vld [vmem:[%s2487_s1 + $0x30] sm:$0xff]  ;;  %v1775_v8 = vld [vmem:[%s2487_s1 + $0x28] sm:$0xff] }
   0x2   :  { %v1785_v1 = vld [vmem:[%s2487_s1 + $0x78] sm:$0xff]  ;;  %454 = vmatpush.bf16.msra.mxu0 %v1777_v0  ;;  %v1784_v5 = vld [vmem:[%s2487_s1 + $0x70] sm:$0xff]  ;;  %v1783_v9 = vld [vmem:[%s2487_s1 + $0x68] sm:$0xff] }
   0x3   :  { %v1793_v2 = vld [vmem:[%s2487_s1 + $0xb8] sm:$0xff]  ;;  %468 = vmatpush.bf16.msra.mxu1 %v1785_v1  ;;  %v1792_v6 = vld [vmem:[%s2487_s1 + $0xb0] sm:$0xff]  ;;  %v1791_v10 = vld [vmem:[%s2487_s1 + $0xa8] sm:$0xff] }
   0x4   :  { %v1801_v3 = vld [vmem:[%s2487_s1 + $0xf8] sm:$0xff]  ;;  %482 = vmatpush.bf16.msra.mxu2 %v1793_v2  ;;  %v1800_v7 = vld [vmem:[%s2487_s1 + $0xf0] sm:$0xff]  ;;  %v1799_v11 = vld [vmem:[%s2487_s1 + $0xe8] sm:$0xff] }
   0x5   :  { %496 = vmatpush.bf16.msra.mxu3 %v1801_v3  ;;  %v1774_v12 = vld [vmem:[%s2487_s1 + $0x20] sm:$0xff]  ;;  %v1773_v16 = vld [vmem:[%s2487_s1 + $0x18] sm:$0xff]  ;;  %v1772_v20 = vld [vmem:[%s2487_s1 + $0x10] sm:$0xff] }
   0x6   :  { %455 = vmatpush.bf16.msra.mxu0 %v1776_v4  ;;  %v1782_v13 = vld [vmem:[%s2487_s1 + $0x60] sm:$0xff]  ;;  %v1781_v17 = vld [vmem:[%s2487_s1 + $0x58] sm:$0xff]  ;;  %v1780_v21 = vld [vmem:[%s2487_s1 + $0x50] sm:$0xff] }
   0x7   :  { %469 = vmatpush.bf16.msra.mxu1 %v1784_v5  ;;  %v1790_v14 = vld [vmem:[%s2487_s1 + $0xa0] sm:$0xff]  ;;  %v1789_v18 = vld [vmem:[%s2487_s1 + $0x98] sm:$0xff]  ;;  %v1788_v22 = vld [vmem:[%s2487_s1 + $0x90] sm:$0xff] }
   0x8   :  { %483 = vmatpush.bf16.msra.mxu2 %v1792_v6  ;;  %v1798_v15 = vld [vmem:[%s2487_s1 + $0xe0] sm:$0xff]  ;;  %v1797_v19 = vld [vmem:[%s2487_s1 + $0xd8] sm:$0xff]  ;;  %v1796_v23 = vld [vmem:[%s2487_s1 + $0xd0] sm:$0xff] }
   0x9   :  { %497 = vmatpush.bf16.msra.mxu3 %v1800_v7  ;;  %v1771_v24 = vld [vmem:[%s2487_s1 + $0x8] sm:$0xff]  ;;  %v1770_v28 = vld [vmem:[%s2487_s1] sm:$0xff]  ;;  %v43_v31 = vld [vmem:[%s2488_s0 + $0x38] sm:$0xff] }
   0xa   :  { %456 = vmatpush.bf16.msra.mxu0 %v1775_v8  ;;  %v1779_v25 = vld [vmem:[%s2487_s1 + $0x48] sm:$0xff]  ;;  %v1778_v29 = vld [vmem:[%s2487_s1 + $0x40] sm:$0xff]  ;;  %v1809_v34 = vld [vmem:[%s2487_s1 + $0x138] sm:$0xff] }
   0xb   :  { %470 = vmatpush.bf16.msra.mxu1 %v1783_v9  ;;  %v1787_v26 = vld [vmem:[%s2487_s1 + $0x88] sm:$0xff]  ;;  %v36_v30 = vld [vmem:[%s2488_s0] sm:$0xff]  ;;  %v1817_v35 = vld [vmem:[%s2487_s1 + $0x178] sm:$0xff] }
   0xc   :  { %484 = vmatpush.bf16.msra.mxu2 %v1791_v10  ;;  %v1795_v27 = vld [vmem:[%s2487_s1 + $0xc8] sm:$0xff]  ;;  %v44_v33 = vld [vmem:[%s2488_s0 + $0x40] sm:$0xff]  ;;  %v38_v38 = vld [vmem:[%s2488_s0 + $0x10] sm:$0xff]  ;;  %v50_v40 = vpack.c.bf16 %v43_v31, %v36_v30 }
   0xd   :  { %498 = vmatpush.bf16.msra.mxu3 %v1799_v11  ;;  %v37_v32 = vld [vmem:[%s2488_s0 + $0x8] sm:$0xff]  ;;  %v1786_v36 = vld [vmem:[%s2487_s1 + $0x80] sm:$0xff]  ;;  %v39_v41 = vld [vmem:[%s2488_s0 + $0x18] sm:$0xff] }
   0xe   :  { %457 = vmatpush.bf16.msra.mxu0 %v1774_v12  ;;  %v1794_v37 = vld [vmem:[%s2487_s1 + $0xc0] sm:$0xff]  ;;  %v45_v39 = vld [vmem:[%s2488_s0 + $0x48] sm:$0xff]  ;;  %v46_v42 = vld [vmem:[%s2488_s0 + $0x50] sm:$0xff]  ;;  %v51_v43 = vpack.c.bf16 %v44_v33, %v37_v32 }
   0xf   :  { %471 = vmatpush.bf16.msra.mxu1 %v1782_v13  ;;  %v1818_v44 = vld [vmem:[%s2487_s1 + $0x180] sm:$0xff]  ;;  %v1808_v45 = vld [vmem:[%s2487_s1 + $0x130] sm:$0xff]  ;;  %v52_v47 = vpack.c.bf16 %v45_v39, %v38_v38  ;;  %v53_v48 = vpack.c.bf16 %v46_v42, %v39_v41  ;;  %v1807_v49 = vld [vmem:[%s2487_s1 + $0x128] sm:$0xff] }
  0x10   :  { %485 = vmatpush.bf16.msra.mxu2 %v1790_v14  ;;  %v1816_v46 = vld [vmem:[%s2487_s1 + $0x170] sm:$0xff]  ;;  %v1815_v50 = vld [vmem:[%s2487_s1 + $0x168] sm:$0xff]  ;;  %v1806_v51 = vld [vmem:[%s2487_s1 + $0x120] sm:$0xff] }
  0x11   :  { %499 = vmatpush.bf16.msra.mxu3 %v1798_v15  ;;  %v1814_v52 = vld [vmem:[%s2487_s1 + $0x160] sm:$0xff]  ;;  %v1805_v53 = vld [vmem:[%s2487_s1 + $0x118] sm:$0xff]  ;;  %v42_v55 = vld [vmem:[%s2488_s0 + $0x30] sm:$0xff] }
  0x12   :  { %458 = vmatpush.bf16.msra.mxu0 %v1773_v16  ;;  %v1813_v54 = vld [vmem:[%s2487_s1 + $0x158] sm:$0xff]  ;;  %v49_v56 = vld [vmem:[%s2488_s0 + $0x68] sm:$0xff]  ;;  %v1804_v57 = vld [vmem:[%s2487_s1 + $0x110] sm:$0xff] }
  0x13   :  { %472 = vmatpush.bf16.msra.mxu1 %v1781_v17  ;;  %v1812_v58 = vld [vmem:[%s2487_s1 + $0x150] sm:$0xff]  ;;  %v56_v59 = vpack.c.bf16 %v49_v56, %v42_v55  ;;  %v1803_v60 = vld [vmem:[%s2487_s1 + $0x108] sm:$0xff]  ;;  %v1802_v62 = vld [vmem:[%s2487_s1 + $0x100] sm:$0xff] }
  0x14   :  { %486 = vmatpush.bf16.msra.mxu2 %v1789_v18  ;;  %v1811_v61 = vld [vmem:[%s2487_s1 + $0x148] sm:$0xff]  ;;  %v1810_v63 = vld [vmem:[%s2487_s1 + $0x140] sm:$0xff]  ;;  %v47_v1 = vld [vmem:[%s2488_s0 + $0x58] sm:$0xff] }
  0x15   :  { %500 = vmatpush.bf16.msra.mxu3 %v1797_v19  ;;  %v40_v0 = vld [vmem:[%s2488_s0 + $0x20] sm:$0xff]  ;;  %v41_v2 = vld [vmem:[%s2488_s0 + $0x28] sm:$0xff]  ;;  %v1569_v6 = vld [vmem:[%s2489_s2 + $0x70] sm:$0xf] }
  0x16   :  { %459 = vmatpush.bf16.msra.mxu0 %v1772_v20  ;;  %v48_v3 = vld [vmem:[%s2488_s0 + $0x60] sm:$0xff]  ;;  %v54_v4 = vpack.c.bf16 %v47_v1, %v40_v0  ;;  %v1834_v7 = vld [vmem:[%s2489_s2 + $0x74] sm:$0xf0]  ;;  %v1833_v8 = vld [vmem:[%s2489_s2 + $0x74] sm:$0xf] }
  0x17   :  { %473 = vmatpush.bf16.msra.mxu1 %v1780_v21  ;;  %v55_v5 = vpack.c.bf16 %v48_v3, %v41_v2  ;;  %v1570_v9 = vor.u32 %v1834_v7, %v1569_v6  ;;  %v1571_v10 = vld [vmem:[%s2489_s2 + $0x78] sm:$0xf0]  ;;  %v1561_v12 = vld [vmem:[%s2489_s2 + $0x60] sm:$0xf]  ;;  %v1832_v13 = vld [vmem:[%s2489_s2 + $0x64] sm:$0xf0] }
  0x18   :  { %487 = vmatpush.bf16.msra.mxu2 %v1788_v22  ;;  %v1574_v11 = vor.u32 %v1833_v8, %v1571_v10  ;;  %v1831_v14 = vld [vmem:[%s2489_s2 + $0x64] sm:$0xf]  ;;  %v1562_v15 = vor.u32 %v1832_v13, %v1561_v12  ;;  %v1563_v16 = vld [vmem:[%s2489_s2 + $0x68] sm:$0xf0]  ;;  %v1553_v18 = vld [vmem:[%s2489_s2 + $0x50] sm:$0xf] }
  0x19   :  { %501 = vmatpush.bf16.msra.mxu3 %v1796_v23  ;;  %v1566_v17 = vor.u32 %v1831_v14, %v1563_v16  ;;  %v1830_v19 = vld [vmem:[%s2489_s2 + $0x54] sm:$0xf0]  ;;  %v1829_v20 = vld [vmem:[%s2489_s2 + $0x54] sm:$0xf]  ;;  %v1555_v22 = vld [vmem:[%s2489_s2 + $0x58] sm:$0xf0] }
  0x1a   :  { %460 = vmatpush.bf16.msra.mxu0 %v1771_v24  ;;  %v1554_v21 = vor.u32 %v1830_v19, %v1553_v18  ;;  %v1558_v23 = vor.u32 %v1829_v20, %v1555_v22  ;;  %v1545_v24 = vld [vmem:[%s2489_s2 + $0x40] sm:$0xf]  ;;  %v1537_v30 = vld [vmem:[%s2489_s2 + $0x30] sm:$0xf]  ;;  %v1826_v31 = vld [vmem:[%s2489_s2 + $0x34] sm:$0xf0] }
  0x1b   :  { %474 = vmatpush.bf16.msra.mxu1 %v1779_v25  ;;  %v1828_v25 = vld [vmem:[%s2489_s2 + $0x44] sm:$0xf0]  ;;  %v1825_v32 = vld [vmem:[%s2489_s2 + $0x34] sm:$0xf]  ;;  %v1538_v33 = vor.u32 %v1826_v31, %v1537_v30  ;;  %v1823_v38 = vld [vmem:[%s2489_s2 + $0x24] sm:$0xf] }
  0x1c   :  { %488 = vmatpush.bf16.msra.mxu2 %v1787_v26  ;;  %v1827_v26 = vld [vmem:[%s2489_s2 + $0x44] sm:$0xf]  ;;  %v1521_v42 = vld [vmem:[%s2489_s2 + $0x10] sm:$0xf] }
  0x1d   :  { %502 = vmatpush.bf16.msra.mxu3 %v1795_v27  ;;  %v1546_v27 = vor.u32 %v1828_v25, %v1545_v24  ;;  %v722_v24 = vld [vmem:[%s2491_s7] sm:$0x3] }
  0x1e   :  { %461 = vmatpush.bf16.msra.mxu0 %v1770_v28  ;;  %v1547_v28 = vld [vmem:[%s2489_s2 + $0x48] sm:$0xf0]  ;;  %v729_v25 = vsel %vm727_vm1, %v722_v24, 0 }
  0x1f   :  { %475 = vmatpush.bf16.msra.mxu1 %v1778_v29  ;;  %v1550_v29 = vor.u32 %v1827_v26, %v1547_v28 }
  0x20   :  { %489 = vmatpush.bf16.msra.mxu2 %v1786_v36  ;;  %v1529_v36 = vld [vmem:[%s2489_s2 + $0x20] sm:$0xf] }
  0x21   :  { %503 = vmatpush.bf16.msra.mxu3 %v1794_v37  ;;  %462 = vmatmul.bf16.vlgmr.msra.gmra.mxu0 %v50_v40  ;;  %v1824_v37 = vld [vmem:[%s2489_s2 + $0x24] sm:$0xf0]  ;;  %v1531_v40 = vld [vmem:[%s2489_s2 + $0x28] sm:$0xf0] }
  0x22   :  { %510 = vmatpush.bf16.msrb.mxu0 %v1809_v34  ;;  %476 = vmatmul.bf16.vlgmr.msra.gmra.mxu1 %v51_v43  ;;  %v1539_v34 = vld [vmem:[%s2489_s2 + $0x38] sm:$0xf0]  ;;  %v1530_v39 = vor.u32 %v1824_v37, %v1529_v36  ;;  %v1534_v41 = vor.u32 %v1823_v38, %v1531_v40  ;;  %v1822_v43 = vld [vmem:[%s2489_s2 + $0x14] sm:$0xf0]  ;;  %v1839_v36 = vld [vmem:[%s2492_s3 + $0x20] sm:$0xff] }
  0x23   :  { %524 = vmatpush.bf16.msrb.mxu1 %v1817_v35  ;;  %490 = vmatmul.bf16.vlgmr.msra.gmra.mxu2 %v52_v47  ;;  %v1542_v35 = vor.u32 %v1825_v32, %v1539_v34  ;;  %v1841_v32 = vld [vmem:[%s2492_s3 + $0x30] sm:$0xff]  ;;  %v1840_v34 = vld [vmem:[%s2492_s3 + $0x28] sm:$0xff] }
  0x24   :  { %545 = vmatpush.bf16.msrb.mxu2 %v1818_v44  ;;  %504 = vmatmul.bf16.vlgmr.msra.gmra.mxu3 %v53_v48  ;;  %v1821_v44 = vld [vmem:[%s2489_s2 + $0x14] sm:$0xf]  ;;  %v1513_v48 = vld [vmem:[%s2489_s2] sm:$0xf] }
  0x25   :  { %649 = vmatpush.bf16.msrb.mxu3 %v1570_v9 }
  0x26   :  { %511 = vmatpush.bf16.msrb.mxu0 %v1808_v45  ;;  %v1522_v45 = vor.u32 %v1822_v43, %v1521_v42 }
  0x27   :  { %525 = vmatpush.bf16.msrb.mxu1 %v1816_v46  ;;  %v1523_v46 = vld [vmem:[%s2489_s2 + $0x18] sm:$0xf0] }
  0x28   :  { %663 = vmatpush.bf16.msra.mxu2 %v1574_v11  ;;  %v1526_v47 = vor.u32 %v1821_v44, %v1523_v46 }
  0x29   :  { %650 = vmatpush.bf16.msrb.mxu3 %v1562_v15 }
  0x2a   :  { %512 = vmatpush.bf16.msrb.mxu0 %v1807_v49  ;;  %v1820_v49 = vld [vmem:[%s2489_s2 + $0x4] sm:$0xf0] }
  0x2b   :  { %526 = vmatpush.bf16.msrb.mxu1 %v1815_v50  ;;  %v1819_v50 = vld [vmem:[%s2489_s2 + $0x4] sm:$0xf] }
  0x2c   :  { %664 = vmatpush.bf16.msra.mxu2 %v1566_v17 }
  0x2d   :  { %651 = vmatpush.bf16.msrb.mxu3 %v1554_v21 }
  0x2e   :  { %513 = vmatpush.bf16.msrb.mxu0 %v1806_v51  ;;  %v1514_v51 = vor.u32 %v1820_v49, %v1513_v48 }
  0x2f   :  { %527 = vmatpush.bf16.msrb.mxu1 %v1814_v52  ;;  %v1515_v52 = vld [vmem:[%s2489_s2 + $0x8] sm:$0xf0] }
  0x30   :  { %665 = vmatpush.bf16.msra.mxu2 %v1558_v23 }
  0x31   :  { %652 = vmatpush.bf16.msrb.mxu3 %v1546_v27 }
  0x32   :  { %514 = vmatpush.bf16.msrb.mxu0 %v1805_v53 }
  0x33   :  { %528 = vmatpush.bf16.msrb.mxu1 %v1813_v54  ;;  %1510 = vmatmul.msk.bf16.vlgmr.msrb.gmra.mxu2 %vm450_vm0, %v56_v59  ;;  %v1518_v54 = vor.u32 %v1819_v50, %v1515_v52 }
  0x34   :  { %666 = vmatpush.bf16.msra.mxu2 %v1550_v29  ;;  %v1842_v29 = vld [vmem:[%s2492_s3 + $0x38] sm:$0xff] }
  0x35   :  { %653 = vmatpush.bf16.msrb.mxu3 %v1538_v33 }
  0x36   :  { %515 = vmatpush.bf16.msrb.mxu0 %v1804_v57  ;;  %v2246_v57 = vld [vmem:[%s2490_s8] sm:$0xff] }
  0x37   :  { %529 = vmatpush.bf16.msrb.mxu1 %v1812_v58  ;;  %v155_v58 = vperm.slane %v2246_v57, 0  ;;  %v680_v21 = vperm.slane %v2246_v57, 4 }
  0x38   :  { %667 = vmatpush.bf16.msra.mxu2 %v1542_v35 }
  0x39   :  { %654 = vmatpush.bf16.msrb.mxu3 %v1530_v39 }
  0x3a   :  { %516 = vmatpush.bf16.msrb.mxu0 %v1803_v60 }
  0x3b   :  { %530 = vmatpush.bf16.msrb.mxu1 %v1811_v61 }
  0x3c   :  { %668 = vmatpush.bf16.msra.mxu2 %v1534_v41 }
  0x3d   :  { %655 = vmatpush.bf16.msrb.mxu3 %v1522_v45 }
  0x3e   :  { %517 = vmatpush.bf16.msrb.mxu0 %v1802_v62 }
  0x3f   :  { %531 = vmatpush.bf16.msrb.mxu1 %v1810_v63 }
  0x40   :  { %669 = vmatpush.bf16.msra.mxu2 %v1526_v47 }
  0x41   :  { %518 = vmatmul.bf16.vlgmr.msrb.gmra.mxu0 %v54_v4  ;;  %656 = vmatpush.bf16.msrb.mxu3 %v1514_v51 }
  0x42   :  { %532 = vmatmul.bf16.vlgmr.msrb.gmra.mxu1 %v55_v5  ;;  %738 = vmatpush.bf16.msra.mxu0 %v729_v25 }
  0x43   :  { %818 = vmatpush.bf16.msra.mxu1 %v1842_v29 }
  0x44   :  { %670 = vmatpush.bf16.msra.mxu2 %v1518_v54 }
  0x47   :  { %819 = vmatpush.bf16.msra.mxu1 %v1841_v32 }
  0x4b   :  { %820 = vmatpush.bf16.msra.mxu1 %v1840_v34 }
  0x4f   :  { %821 = vmatpush.bf16.msra.mxu1 %v1839_v36 }
  0x9e   :  { %v463_v53 = vpop.f32.mrf.mxu0 }
  0x9f   :  { %v477_v55 = vpop.f32.mrf.mxu1  ;;  %v464_v59 = vadd.f32 %v463_v53, %v155_v58 }
  0xa1   :  { %v478_v0 = vadd.f32 %v477_v55, %v464_v59 }
  0xa6   :  { %v491_v56 = vpop.f32.mrf.mxu2  ;;  %v465_v60 = vpop.f32.mrf.mxu0 }
  0xa7   :  { %v479_v61 = vpop.f32.mrf.mxu1  ;;  %v505_v63 = vpop.f32.mrf.mxu3  ;;  %v466_v1 = vadd.f32 %v465_v60, %v155_v58  ;;  %v492_v2 = vadd.f32 %v491_v56, %v478_v0  ;;  %v1838_v60 = vld [vmem:[%s2492_s3 + $0x18] sm:$0xff] }
  0xa8   :  { %822 = vmatpush.bf16.msra.mxu1 %v1838_v60 }
  0xa9   :  { %v480_v3 = vadd.f32 %v479_v61, %v466_v1  ;;  %v506_v7 = vadd.f32 %v505_v63, %v492_v2  ;;  %v1837_v61 = vld [vmem:[%s2492_s3 + $0x10] sm:$0xff]  ;;  %v1835_v63 = vld [vmem:[%s2492_s3] sm:$0xff]  ;;  %v677_v1 = vperm.slane %v2246_v57, 3 }
  0xac   :  { %823 = vmatpush.bf16.msra.mxu1 %v1837_v61  ;;  %v1646_v61 = vld [vmem:[%s2493_s4 + $0x48] sm:$0xf0] }
  0xae   :  { %v493_v62 = vpop.f32.mrf.mxu2 }
  0xaf   :  { %v494_v8 = vadd.f32 %v493_v62, %v480_v3  ;;  %v507_v9 = vpop.f32.mrf.mxu3  ;;  %v1836_v62 = vld [vmem:[%s2492_s3 + $0x8] sm:$0xff] }
  0xb0   :  { %824 = vmatpush.bf16.msra.mxu1 %v1836_v62 }
  0xb1   :  { %v508_v11 = vadd.f32 %v507_v9, %v494_v8 }
  0xb4   :  { %825 = vmatpush.bf16.msra.mxu1 %v1835_v63  ;;  %v1636_v63 = vld [vmem:[%s2493_s4 + $0x30] sm:$0xf] }
  0xb6   :  { %v547_v6 = vpop.f32.mrf.mxu2 }
  0xbe   :  { %v519_v4 = vpop.f32.mrf.mxu0  ;;  %v549_v17 = vpop.f32.mrf.mxu2 }
  0xbf   :  { %v533_v5 = vpop.f32.mrf.mxu1  ;;  %v520_v10 = vadd.f32 %v519_v4, %v506_v7 }
  0xc1   :  { %v534_v13 = vadd.f32 %v533_v5, %v520_v10  ;;  %v745_v5 = vperm.slane %v2246_v57, 2 }
  0xc3   :  { %v548_v18 = vadd.f32 %v547_v6, %v534_v13 }
  0xc6   :  { %v521_v12 = vpop.f32.mrf.mxu0 }
  0xc7   :  { %v522_v14 = vadd.f32 %v521_v12, %v508_v11  ;;  %v535_v15 = vpop.f32.mrf.mxu1 }
  0xc9   :  { %v536_v16 = vadd.f32 %v535_v15, %v522_v14  ;;  %v769_v15 = vperm.slane %v2246_v57, 5 }
  0xcb   :  { %v550_v19 = vadd.f32 %v549_v17, %v536_v16  ;;  %v832_v16 = vperm.slane %v2246_v57, 1 }
  0xcd   :  { %v552_v20 = vpack.c.bf16 %v550_v19, %v548_v18 }
  0xcf   :  { %657 = vmatmul.bf16.vlgmr.msrb.gmra.mxu3 %v552_v20  ;;  %671 = vmatmul.bf16.vlgmr.msra.gmra.mxu2 %v552_v20 }
 0x152   :  { %v672_v22 = vpop.f32.mrf.mxu2  ;;  %v658_v0 = vpop.f32.mrf.mxu3 }
 0x153   :  { %v681_v23 = vsub.f32 %v680_v21, %v672_v22  ;;  %v678_v4 = vadd.f32 %v677_v1, %v658_v0  ;;  %v1850_v0 = vld [vmem:[%s2493_s4 + $0x34] sm:$0xf0] }
 0x155   :  { %v1575_v26 = vmul.f32 -1.442695, %v681_v23  ;;  %v746_v7 = vsub.f32 %v745_v5, %v678_v4  ;;  %v1907_v23 = vmov 128.0  }
 0x157   :  { %1889 = vpow2.f32 %v1575_v26 }
 0x15a   :  { %v674_v27 = vpop.f32.mrf.mxu2  ;;  %v660_v2 = vpop.f32.mrf.mxu3 }
 0x15b   :  { %v682_v28 = vsub.f32 %v680_v21, %v674_v27  ;;  %v679_v6 = vadd.f32 %v677_v1, %v660_v2  ;;  %v1849_v1 = vld [vmem:[%s2493_s4 + $0x34] sm:$0xf]  ;;  %v1637_v2 = vor.u32 %v1850_v0, %v1636_v63  ;;  %v1863_v63 = vld [vmem:[%s2494_s5 + $0x20] sm:$0xff]  ;;  %v1868_v0 = vld [vmem:[%s2494_s5 + $0x48] sm:$0xff] }
 0x15d   :  { %v1890_v30 = vpop.eup %1889  ;;  %v1576_v31 = vmul.f32 -1.442695, %v682_v28  ;;  %v747_v9 = vsub.f32 %v745_v5, %v679_v6  ;;  %v1628_v5 = vld [vmem:[%s2493_s4 + $0x20] sm:$0xf] }
 0x15e   :  { %v689_v33 = vadd.f32 1.0, %v1890_v30 }
 0x15f   :  { %1891 = vpow2.f32 %v1576_v31 }
 0x160   :  { %1893 = vrcp.f32 %v689_v33  ;;  %vm696_vm3 = vweird.f32 %v689_v33  ;;  %v702_v46 = vand.u32 2147483648, %v689_v33  ;;  %v700_v49 = vand.u32 2147483647, %v689_v33 }
 0x162   :  { %v703_v53 = vor.u32 1.1754944e-38, %v702_v46  ;;  %vm701_vm8 = vcmp.eq.f32.partialorder %v700_v49, 8.507059e+37  ;;  %v1855_v46 = vld [vmem:[%s2493_s4 + $0x64] sm:$0xf] }
 0x165   :  { %v1892_v35 = vpop.eup %1891 }
 0x166   :  { %v1894_v37 = vpop.eup %1893  ;;  %v690_v38 = vadd.f32 1.0, %v1892_v35 }
 0x167   :  { %v692_v39 = vmul.f32 %v1894_v37, %v689_v33  ;;  %vm697_vm2 = vweird.f32 %v1894_v37 }
 0x168   :  { %1895 = vrcp.f32 %v690_v38  ;;  %v717_v47 = vand.u32 2147483648, %v690_v38  ;;  %v715_v50 = vand.u32 2147483647, %v690_v38  ;;  %vm698_vm5 = vmor %vm696_vm3, %vm697_vm2  ;;  %vm711_vm6 = vweird.f32 %v690_v38 }
 0x169   :  { %v693_v40 = vsub.f32 1.0, %v692_v39  ;;  %1897 = vrcp.f32 %v1907_v23  ;;  %v1858_v39 = vld [vmem:[%s2493_s4 + $0x74] sm:$0xf0] }
 0x16a   :  { %v718_v54 = vor.u32 1.1754944e-38, %v717_v47  ;;  %vm716_vm9 = vcmp.eq.f32.partialorder %v715_v50, 8.507059e+37  ;;  %v1652_v50 = vld [vmem:[%s2493_s4 + $0x50] sm:$0xf] }
 0x16b   :  { %v694_v41 = vmul.f32 %v1894_v37, %v693_v40  ;;  %v1857_v40 = vld [vmem:[%s2493_s4 + $0x74] sm:$0xf] }
 0x16d   :  { %v695_v45 = vadd.f32 %v1894_v37, %v694_v41 }
 0x16e   :  { %v1896_v42 = vpop.eup %1895 }
 0x16f   :  { %v707_v43 = vmul.f32 %v1896_v42, %v690_v38  ;;  %vm712_vm4 = vweird.f32 %v1896_v42  ;;  %v699_v51 = vsel %vm698_vm5, %v1894_v37, %v695_v45  ;;  %v1898_v24 = vpop.eup %1897  ;;  %v1668_v38 = vld [vmem:[%s2493_s4 + $0x70] sm:$0xf]  ;;  %v1856_v45 = vld [vmem:[%s2493_s4 + $0x64] sm:$0xf0] }
 0x170   :  { %vm713_vm7 = vmor %vm711_vm6, %vm712_vm4  ;;  %v704_v56 = vsel %vm701_vm8, %v703_v53, %v699_v51  ;;  %v840_v25 = vmul.f32 128.0, %v1898_v24  ;;  %vm844_vm11 = vweird.f32 %v1898_v24  ;;  %v1669_v41 = vor.u32 %v1858_v39, %v1668_v38  ;;  %v1854_v51 = vld [vmem:[%s2493_s4 + $0x54] sm:$0xf0]  ;;  %v1872_v38 = vld [vmem:[%s2494_s5 + $0x68] sm:$0xff] }
 0x171   :  { %v708_v44 = vsub.f32 1.0, %v707_v43  ;;  %v1653_v53 = vor.u32 %v1854_v51, %v1652_v50  ;;  %v1864_v39 = vld [vmem:[%s2494_s5 + $0x28] sm:$0xff] }
 0x172   :  { %v841_v26 = vsub.f32 1.0, %v840_v25  ;;  %987 = vmatpush.bf16.msra.mxu3 %v1669_v41 }
 0x173   :  { %v709_v48 = vmul.f32 %v1896_v42, %v708_v44  ;;  %v1660_v44 = vld [vmem:[%s2493_s4 + $0x60] sm:$0xf] }
 0x174   :  { %v842_v27 = vmul.f32 %v1898_v24, %v841_v26  ;;  %v1661_v47 = vor.u32 %v1856_v45, %v1660_v44  ;;  %v1874_v26 = vld [vmem:[%s2494_s5 + $0x78] sm:$0xff] }
 0x175   :  { %v710_v52 = vadd.f32 %v1896_v42, %v709_v48  ;;  %v1662_v48 = vld [vmem:[%s2493_s4 + $0x68] sm:$0xf0]  ;;  %1164 = vmatpush.bf16.msrb.mxu1 %v1874_v26 }
 0x176   :  { %v843_v28 = vadd.f32 %v1898_v24, %v842_v27  ;;  %v1665_v49 = vor.u32 %v1855_v46, %v1662_v48  ;;  %988 = vmatpush.bf16.msra.mxu3 %v1661_v47  ;;  %v1866_v27 = vld [vmem:[%s2494_s5 + $0x38] sm:$0xff] }
 0x177   :  { %v714_v55 = vsel %vm713_vm7, %v1896_v42, %v710_v52  ;;  %v1670_v42 = vld [vmem:[%s2493_s4 + $0x78] sm:$0xf0]  ;;  %v1853_v52 = vld [vmem:[%s2493_s4 + $0x54] sm:$0xf]  ;;  %1150 = vmatpush.bf16.msrb.mxu2 %v1866_v27 }
 0x178   :  { %v719_v58 = vsel %vm716_vm9, %v718_v54, %v714_v55  ;;  %v2281_v29 = vsel %vm844_vm11, %v1898_v24, %v843_v28  ;;  %v1673_v43 = vor.u32 %v1857_v40, %v1670_v42  ;;  %v1654_v54 = vld [vmem:[%s2493_s4 + $0x58] sm:$0xf0]  ;;  %v1871_v42 = vld [vmem:[%s2494_s5 + $0x60] sm:$0xff] }
 0x179   :  { %v721_v59 = vpack.c.bf16 %v719_v58, %v704_v56  ;;  %v1657_v55 = vor.u32 %v1853_v52, %v1654_v54  ;;  %v1644_v56 = vld [vmem:[%s2493_s4 + $0x40] sm:$0xf]  ;;  %v1852_v58 = vld [vmem:[%s2493_s4 + $0x44] sm:$0xf0]  ;;  %v882_v52 = vperm.slane %v2246_v57, 6 }
 0x17a   :  { %1001 = vmatpush.bf16.msrb.mxu0 %v1673_v43  ;;  %989 = vmatpush.bf16.msra.mxu3 %v1653_v53  ;;  %v1645_v60 = vor.u32 %v1852_v58, %v1644_v56  ;;  %v885_v58 = vperm.slane %v2246_v57, 7  ;;  %v1869_v57 = vld [vmem:[%s2494_s5 + $0x50] sm:$0xff] }
 0x17b   :  { %1577 = vmatmul.msk.bf16.vlgmr.msra.gmra.mxu0 %vm723_vm10, %v721_v59  ;;  %v1851_v59 = vld [vmem:[%s2493_s4 + $0x44] sm:$0xf] }
 0x17c   :  { %v1649_v62 = vor.u32 %v1851_v59, %v1646_v61 }
 0x17e   :  { %1002 = vmatpush.bf16.msrb.mxu0 %v1665_v49  ;;  %990 = vmatpush.bf16.msra.mxu3 %v1645_v60 }
 0x182   :  { %1003 = vmatpush.bf16.msrb.mxu0 %v1657_v55  ;;  %991 = vmatpush.bf16.msra.mxu3 %v1637_v2  ;;  %v1867_v2 = vld [vmem:[%s2494_s5 + $0x40] sm:$0xff] }
 0x186   :  { %1004 = vmatpush.bf16.msrb.mxu0 %v1649_v62 }
 0x1f8   :  { %v740_v3 = vpop.f32.mrf.mxu0 }
 0x1f9   :  { %v748_v8 = vmul.f32 %v746_v7, %v740_v3  ;;  %v1638_v3 = vld [vmem:[%s2493_s4 + $0x38] sm:$0xf0]  ;;  %v1847_v7 = vld [vmem:[%s2493_s4 + $0x24] sm:$0xf] }
 0x1fb   :  { %v750_v12 = vadd.f32 %v748_v8, %v678_v4  ;;  %v1641_v4 = vor.u32 %v1849_v1, %v1638_v3  ;;  %v1861_v1 = vld [vmem:[%s2494_s5 + $0x10] sm:$0xff]  ;;  %v1860_v3 = vld [vmem:[%s2494_s5 + $0x8] sm:$0xff] }
 0x1fd   :  { %1005 = vmatpush.bf16.msrb.mxu0 %v1641_v4  ;;  %v1859_v4 = vld [vmem:[%s2494_s5] sm:$0xff] }
 0x200   :  { %v742_v10 = vpop.f32.mrf.mxu0 }
 0x201   :  { %v749_v11 = vmul.f32 %v747_v9, %v742_v10  ;;  %v1630_v9 = vld [vmem:[%s2493_s4 + $0x28] sm:$0xf0] }
 0x202   :  { %v1633_v10 = vor.u32 %v1847_v7, %v1630_v9 }
 0x203   :  { %v751_v13 = vadd.f32 %v749_v11, %v679_v6  ;;  %v1848_v6 = vld [vmem:[%s2493_s4 + $0x24] sm:$0xf0]  ;;  %v1620_v11 = vld [vmem:[%s2493_s4 + $0x10] sm:$0xf] }
 0x204   :  { %v1629_v8 = vor.u32 %v1848_v6, %v1628_v5  ;;  %1006 = vmatpush.bf16.msrb.mxu0 %v1633_v10  ;;  %v35_v5 = vld [vmem:[%s2490_s8 + $0x18] sm:$0xff] }
 0x205   :  { %v752_v14 = vpack.c.bf16 %v751_v13, %v750_v12  ;;  %v1846_v12 = vld [vmem:[%s2493_s4 + $0x14] sm:$0xf0]  ;;  %v1845_v13 = vld [vmem:[%s2493_s4 + $0x14] sm:$0xf]  ;;  %v906_v7 = vperm.slane %v35_v5, 0 }
 0x206   :  { %992 = vmatpush.bf16.msra.mxu3 %v1629_v8  ;;  %v2449_v8 = vld [vmem:[%s2490_s8 + $0x10] sm:$0xff] }
 0x207   :  { %826 = vmatmul.bf16.vlgmr.msra.gmra.mxu1 %v752_v14  ;;  %v1621_v14 = vor.u32 %v1846_v12, %v1620_v11  ;;  %v905_v12 = vperm.slane %v2449_v8, 0 }
 0x20a   :  { %993 = vmatpush.bf16.msra.mxu3 %v1621_v14 }
 0x284   :  { %v827_v17 = vpop.f32.mrf.mxu1 }
 0x285   :  { %v828_v18 = vadd.f32 %v827_v17, %v769_v15  ;;  %v1612_v17 = vld [vmem:[%s2493_s4] sm:$0xf] }
 0x287   :  { %v833_v19 = vadd.f32 %v832_v16, %v828_v18  ;;  %v1844_v18 = vld [vmem:[%s2493_s4 + $0x4] sm:$0xf0] }
 0x289   :  { %835 = vadd.xlane.f32.xlu0 %v833_v19 }
 0x28c   :  { %v829_v20 = vpop.f32.mrf.mxu1 }
 0x28d   :  { %v830_v21 = vadd.f32 %v829_v20, %v769_v15  ;;  %v1622_v15 = vld [vmem:[%s2493_s4 + $0x18] sm:$0xf0] }
 0x28f   :  { %v834_v22 = vadd.f32 %v832_v16, %v830_v21  ;;  %v1625_v16 = vor.u32 %v1845_v13, %v1622_v15  ;;  %v1613_v21 = vor.u32 %v1844_v18, %v1612_v17 }
 0x291   :  { %837 = vadd.xlane.f32.xlu0 %v834_v22  ;;  %1007 = vmatpush.bf16.msrb.mxu0 %v1625_v16 }
 0x292   :  { %994 = vmatpush.bf16.msra.mxu3 %v1613_v21 }
 0x2fc   :  { %v836_v30 = vpop.xlane.xlu0 %835 }
 0x2fd   :  { %v846_v31 = vmul.f32 %v2281_v29, %v836_v30 }
 0x2ff   :  { %v2284_v32 = vsub.f32 %v833_v19, %v846_v31  ;;  %v1843_v19 = vld [vmem:[%s2493_s4 + $0x4] sm:$0xf]  ;;  %v1873_v31 = vld [vmem:[%s2494_s5 + $0x70] sm:$0xff] }
 0x300   :  { %1165 = vmatpush.bf16.msrb.mxu1 %v1873_v31 }
 0x301   :  { %v850_v33 = vmul.f32 %v2284_v32, %v2284_v32 }
 0x303   :  { %852 = vadd.xlane.f32.xlu1 %v850_v33  ;;  %v1865_v33 = vld [vmem:[%s2494_s5 + $0x30] sm:$0xff] }
 0x304   :  { %v838_v34 = vpop.xlane.xlu0 %837  ;;  %1151 = vmatpush.bf16.msrb.mxu2 %v1865_v33  ;;  %1166 = vmatpush.bf16.msrb.mxu1 %v1872_v38 }
 0x305   :  { %v847_v35 = vmul.f32 %v2281_v29, %v838_v34 }
 0x307   :  { %v2289_v36 = vsub.f32 %v834_v22, %v847_v35  ;;  %v1614_v22 = vld [vmem:[%s2493_s4 + $0x8] sm:$0xf0] }
 0x308   :  { %v1617_v24 = vor.u32 %v1843_v19, %v1614_v22  ;;  %1152 = vmatpush.bf16.msrb.mxu2 %v1864_v39  ;;  %1167 = vmatpush.bf16.msrb.mxu1 %v1871_v42 }
 0x309   :  { %v851_v37 = vmul.f32 %v2289_v36, %v2289_v36 }
 0x30a   :  { %1008 = vmatpush.bf16.msrb.mxu0 %v1617_v24 }
 0x30b   :  { %854 = vadd.xlane.f32.xlu1 %v851_v37 }
 0x30c   :  { %1153 = vmatpush.bf16.msrb.mxu2 %v1863_v63 }
 0x376   :  { %v853_v20 = vpop.xlane.xlu1 %852 }
 0x377   :  { %v856_v23 = vmul.f32 %v853_v20, %v2281_v29 }
 0x379   :  { %v858_v25 = vadd.f32 1e-05, %v856_v23  ;;  %v1053_v23 = vperm.slane %v2449_v8, 1 }
 0x37b   :  { %1899 = vrsqrt.f32 %v858_v25  ;;  %vm866_vm13 = vweird.f32 %v858_v25 }
 0x37e   :  { %v855_v28 = vpop.xlane.xlu1 %854 }
 0x37f   :  { %v857_v30 = vmul.f32 %v855_v28, %v2281_v29 }
 0x381   :  { %v1900_v34 = vpop.eup %1899  ;;  %v859_v35 = vadd.f32 1e-05, %v857_v30 }
 0x382   :  { %v861_v37 = vmul.f32 %v1900_v34, %v858_v25  ;;  %vm867_vm12 = vweird.f32 %v1900_v34 }
 0x383   :  { %1901 = vrsqrt.f32 %v859_v35  ;;  %vm868_vm14 = vmor %vm866_vm13, %vm867_vm12  ;;  %vm876_vm0 = vweird.f32 %v859_v35 }
 0x384   :  { %v862_v40 = vmul.f32 %v1900_v34, %v861_v37 }
 0x386   :  { %v863_v41 = vmul.f32 0.5, %v862_v40 }
 0x388   :  { %v864_v43 = vsub.f32 1.5, %v863_v41 }
 0x389   :  { %v1902_v44 = vpop.eup %1901 }
 0x38a   :  { %v865_v45 = vmul.f32 %v1900_v34, %v864_v43  ;;  %v871_v46 = vmul.f32 %v1902_v44, %v859_v35  ;;  %vm877_vm15 = vweird.f32 %v1902_v44 }
 0x38b   :  { %vm878_vm1 = vmor %vm876_vm0, %vm877_vm15 }
 0x38c   :  { %v872_v47 = vmul.f32 %v1902_v44, %v871_v46  ;;  %v869_v48 = vsel %vm868_vm14, %v1900_v34, %v865_v45  ;;  %v1882_v45 = vld [vmem:[%s2495_s6 + $0x38] sm:$0xff]  ;;  %v1881_v46 = vld [vmem:[%s2495_s6 + $0x30] sm:$0xff] }
 0x38d   :  { %v880_v51 = vmul.f32 %v869_v48, %v2284_v32  ;;  %v1870_v32 = vld [vmem:[%s2494_s5 + $0x58] sm:$0xff]  ;;  %1292 = vmatpush.bf16.msrb.mxu3 %v1882_v45  ;;  %v1879_v48 = vld [vmem:[%s2495_s6 + $0x20] sm:$0xff] }
 0x38e   :  { %v873_v49 = vmul.f32 0.5, %v872_v47  ;;  %1168 = vmatpush.bf16.msrb.mxu1 %v1870_v32  ;;  %v1880_v47 = vld [vmem:[%s2495_s6 + $0x28] sm:$0xff] }
 0x38f   :  { %v883_v56 = vmul.f32 %v882_v52, %v880_v51  ;;  %v1876_v51 = vld [vmem:[%s2495_s6 + $0x8] sm:$0xff] }
 0x390   :  { %v874_v50 = vsub.f32 1.5, %v873_v49  ;;  %v1878_v49 = vld [vmem:[%s2495_s6 + $0x18] sm:$0xff] }
 0x391   :  { %v886_v60 = vadd.f32 %v885_v58, %v883_v56  ;;  %1293 = vmatpush.bf16.msrb.mxu3 %v1881_v46 }
 0x392   :  { %v875_v53 = vmul.f32 %v1902_v44, %v874_v50  ;;  %1169 = vmatpush.bf16.msrb.mxu1 %v1869_v57  ;;  %v1877_v50 = vld [vmem:[%s2495_s6 + $0x10] sm:$0xff] }
 0x394   :  { %v879_v54 = vsel %vm878_vm1, %v1902_v44, %v875_v53  ;;  %v1875_v53 = vld [vmem:[%s2495_s6] sm:$0xff] }
 0x395   :  { %v881_v55 = vmul.f32 %v879_v54, %v2289_v36  ;;  %v1862_v36 = vld [vmem:[%s2494_s5 + $0x18] sm:$0xff]  ;;  %1294 = vmatpush.bf16.msrb.mxu3 %v1880_v47 }
 0x396   :  { %1154 = vmatpush.bf16.msrb.mxu2 %v1862_v36  ;;  %1170 = vmatpush.bf16.msrb.mxu1 %v1868_v0 }
 0x397   :  { %v884_v59 = vmul.f32 %v882_v52, %v881_v55 }
 0x399   :  { %v887_v61 = vadd.f32 %v885_v58, %v884_v59  ;;  %1295 = vmatpush.bf16.msrb.mxu3 %v1879_v48 }
 0x39a   :  { %1155 = vmatpush.bf16.msrb.mxu2 %v1861_v1  ;;  %1171 = vmatpush.bf16.msrb.mxu1 %v1867_v2 }
 0x39b   :  { %v888_v62 = vpack.c.bf16 %v887_v61, %v886_v60 }
 0x39d   :  { %995 = vmatmul.bf16.vlgmr.msra.gmra.mxu3 %v888_v62  ;;  %1009 = vmatmul.bf16.vlgmr.msrb.gmra.mxu0 %v888_v62 }
 0x39e   :  { %1156 = vmatpush.bf16.msrb.mxu2 %v1860_v3  ;;  %1296 = vmatpush.bf16.msrb.mxu3 %v1878_v49 }
 0x3a2   :  { %1157 = vmatpush.bf16.msrb.mxu2 %v1859_v4  ;;  %1297 = vmatpush.bf16.msrb.mxu3 %v1877_v50 }
 0x3a6   :  { %1298 = vmatpush.bf16.msrb.mxu3 %v1876_v51 }
 0x3aa   :  { %1299 = vmatpush.bf16.msrb.mxu3 %v1875_v53 }
 0x41a   :  { %v1010_v6 = vpop.f32.mrf.mxu0 }
 0x41b   :  { %v1011_v10 = vadd.f32 %v1010_v6, %v906_v7 }
 0x41d   :  { %v1016_v14 = vmax.f32 %v1011_v10, 0.0 }
 0x420   :  { %v996_v9 = vpop.f32.mrf.mxu3 }
 0x421   :  { %v997_v16 = vadd.f32 %v996_v9, %v905_v12 }
 0x422   :  { %v1012_v11 = vpop.f32.mrf.mxu0 }
 0x423   :  { %v1013_v13 = vadd.f32 %v1012_v11, %v906_v7  ;;  %v1015_v20 = vmax.f32 %v997_v16, 0.0  ;;  %v1223_v11 = vperm.slane %v2449_v8, 3 }
 0x425   :  { %v1018_v15 = vmax.f32 %v1013_v13, 0.0 }
 0x427   :  { %v1020_v17 = vpack.c.bf16 %v1018_v15, %v1016_v14 }
 0x428   :  { %v998_v18 = vpop.f32.mrf.mxu3 }
 0x429   :  { %v999_v19 = vadd.f32 %v998_v18, %v905_v12  ;;  %1172 = vmatmul.bf16.vlgmr.msrb.gmra.mxu1 %v1020_v17  ;;  %v1243_v17 = vperm.slane %v2449_v8, 4 }
 0x42b   :  { %v1017_v21 = vmax.f32 %v999_v19, 0.0 }
 0x42d   :  { %v1019_v22 = vpack.c.bf16 %v1017_v21, %v1015_v20 }
 0x42f   :  { %1158 = vmatmul.bf16.vlgmr.msrb.gmra.mxu2 %v1019_v22 }
 0x4a6   :  { %v1173_v24 = vpop.f32.mrf.mxu1 }
 0x4ae   :  { %v1175_v33 = vpop.f32.mrf.mxu1 }
 0x4b2   :  { %v1159_v25 = vpop.f32.mrf.mxu2 }
 0x4b3   :  { %v1160_v26 = vadd.f32 %v1159_v25, %v1053_v23 }
 0x4b5   :  { %v1174_v27 = vadd.f32 %v1173_v24, %v1160_v26 }
 0x4b7   :  { %v1178_v28 = vadd.f32 %v1174_v27, %v886_v60 }
 0x4b9   :  { %1180 = vadd.xlane.f32.xlu2 %v1178_v28 }
 0x4ba   :  { %v1161_v30 = vpop.f32.mrf.mxu2 }
 0x4bb   :  { %v1162_v31 = vadd.f32 %v1161_v30, %v1053_v23 }
 0x4bd   :  { %v1176_v34 = vadd.f32 %v1175_v33, %v1162_v31 }
 0x4bf   :  { %v1179_v35 = vadd.f32 %v1176_v34, %v887_v61 }
 0x4c1   :  { %1182 = vadd.xlane.f32.xlu2 %v1179_v35 }
 0x52c   :  { %v1181_v37 = vpop.xlane.xlu2 %1180 }
 0x52d   :  { %v1184_v38 = vmul.f32 %v1181_v37, %v2281_v29 }
 0x52f   :  { %v1186_v39 = vsub.f32 %v1178_v28, %v1184_v38 }
 0x531   :  { %v1188_v40 = vmul.f32 %v1186_v39, %v1186_v39 }
 0x533   :  { %1190 = vadd.xlane.f32.xlu0 %v1188_v40 }
 0x534   :  { %v1183_v41 = vpop.xlane.xlu2 %1182 }
 0x535   :  { %v1185_v42 = vmul.f32 %v1183_v41, %v2281_v29 }
 0x537   :  { %v1187_v43 = vsub.f32 %v1179_v35, %v1185_v42 }
 0x539   :  { %v1189_v44 = vmul.f32 %v1187_v43, %v1187_v43 }
 0x53b   :  { %1192 = vadd.xlane.f32.xlu1 %v1189_v44 }
 0x5a6   :  { %v1191_v52 = vpop.xlane.xlu0 %1190 }
 0x5a7   :  { %v1194_v54 = vmul.f32 %v1191_v52, %v2281_v29 }
 0x5a9   :  { %v1196_v55 = vadd.f32 1e-05, %v1194_v54 }
 0x5ab   :  { %1903 = vrsqrt.f32 %v1196_v55  ;;  %vm1204_vm3 = vweird.f32 %v1196_v55 }
 0x5ae   :  { %v1193_v56 = vpop.xlane.xlu1 %1192 }
 0x5af   :  { %v1195_v58 = vmul.f32 %v1193_v56, %v2281_v29  ;;  %v1220_v29 = vperm.slane %v2449_v8, 2 }
 0x5b1   :  { %v1904_v59 = vpop.eup %1903  ;;  %v1197_v60 = vadd.f32 1e-05, %v1195_v58 }
 0x5b2   :  { %v1199_v61 = vmul.f32 %v1904_v59, %v1196_v55  ;;  %vm1205_vm2 = vweird.f32 %v1904_v59 }
 0x5b3   :  { %1905 = vrsqrt.f32 %v1197_v60  ;;  %vm1206_vm4 = vmor %vm1204_vm3, %vm1205_vm2  ;;  %vm1214_vm6 = vweird.f32 %v1197_v60 }
 0x5b4   :  { %v1200_v62 = vmul.f32 %v1904_v59, %v1199_v61 }
 0x5b6   :  { %v1201_v32 = vmul.f32 0.5, %v1200_v62 }
 0x5b8   :  { %v1202_v63 = vsub.f32 1.5, %v1201_v32 }
 0x5b9   :  { %v1906_v57 = vpop.eup %1905 }
 0x5ba   :  { %v1203_v36 = vmul.f32 %v1904_v59, %v1202_v63  ;;  %v1209_v0 = vmul.f32 %v1906_v57, %v1197_v60  ;;  %vm1215_vm5 = vweird.f32 %v1906_v57 }
 0x5bb   :  { %vm1216_vm7 = vmor %vm1214_vm6, %vm1215_vm5 }
 0x5bc   :  { %v1210_v1 = vmul.f32 %v1906_v57, %v1209_v0  ;;  %v1207_v2 = vsel %vm1206_vm4, %v1904_v59, %v1203_v36 }
 0x5bd   :  { %v1218_v5 = vmul.f32 %v1207_v2, %v1186_v39 }
 0x5be   :  { %v1211_v3 = vmul.f32 0.5, %v1210_v1 }
 0x5bf   :  { %v1221_v10 = vmul.f32 %v1220_v29, %v1218_v5 }
 0x5c0   :  { %v1212_v4 = vsub.f32 1.5, %v1211_v3 }
 0x5c1   :  { %v1224_v13 = vadd.f32 %v1223_v11, %v1221_v10 }
 0x5c2   :  { %v1213_v6 = vmul.f32 %v1906_v57, %v1212_v4 }
 0x5c4   :  { %v1217_v7 = vsel %vm1216_vm7, %v1906_v57, %v1213_v6 }
 0x5c5   :  { %v1219_v9 = vmul.f32 %v1217_v7, %v1187_v43 }
 0x5c7   :  { %v1222_v12 = vmul.f32 %v1220_v29, %v1219_v9 }
 0x5c9   :  { %v1225_v14 = vadd.f32 %v1223_v11, %v1222_v12 }
 0x5cb   :  { %v1226_v15 = vpack.c.bf16 %v1225_v14, %v1224_v13 }
 0x5cd   :  { %1300 = vmatmul.bf16.vlgmr.msrb.gmra.mxu3 %v1226_v15 }
 0x650   :  { %v1301_v16 = vpop.f32.mrf.mxu3 }
 0x651   :  { %v1302_v19 = vadd.f32 %v1301_v16, %v1243_v17 }
 0x658   :  { %v1303_v18 = vpop.f32.mrf.mxu3 }
 0x659   :  { %v1304_v20 = vadd.f32 %v1303_v18, %v1243_v17 }
 0x65b   :  { %v1886_v21 = vpack.c.bf16 %v1304_v20, %v1302_v19 }
 0x65d   :  { %1887 = vst [vmem:[%s2496_s9] sm:$0xff] %v1886_v21  }

</bundles_post_ra>
